<compile_context>
chip_gen: v7x
topology: tpu7x:2x2x1
jax: 0.10.0
libtpu: 0.0.40
codegen_flags: <defaults>
</compile_context>

<pallas_src>
import numpy as np
import jax
import jax.numpy as jnp
from jax.experimental import pallas as pl
from jax.experimental.pallas import tpu as pltpu


# ----------------------------------------------------------------------------
# schedule (plain numpy glue, identical to the PyTorch module's __init__)
# ----------------------------------------------------------------------------
def cosine_beta_schedule(timesteps, s=0.008):
    steps = timesteps + 1
    x = np.linspace(0, steps, steps)
    alphas_cumprod = np.cos((x / steps + s) / (1 + s) * np.pi * 0.5) ** 2
    alphas_cumprod = alphas_cumprod / alphas_cumprod[0]
    betas = 1 - alphas_cumprod[1:] / alphas_cumprod[:-1]
    return np.clip(betas, 0, 0.999)


# ----------------------------------------------------------------------------
# fused Pallas kernel: q_sample + denoise (1x1-conv MLP) + |noise - recon| mean
# ----------------------------------------------------------------------------
def gaussian_diffusion_loss(x_nchw, cond_nchw, noise_nchw, t, params, sched):
    """Forward pass of GaussianDiffusion (loss_type='l1') with a given t/noise."""
    B, C, H, W = x_nchw.shape
    HW = H * W
    N = B * HW                         # batch folded onto the lane axis
    HD = params["w1x"].shape[1]
    inv_n = 1.0 / float(B * C * H * W)

    # NCHW -> [C, B*HW]: lane index = b*HW + spatial; spatial+batch land on lanes.
    x2 = jnp.transpose(x_nchw, (1, 0, 2, 3)).reshape(C, N).astype(jnp.float32)
    n2 = jnp.transpose(noise_nchw, (1, 0, 2, 3)).reshape(C, N).astype(jnp.float32)
    c2 = jnp.transpose(cond_nchw, (1, 0, 2, 3)).reshape(C, N)

    # `extract(a, t, shape)` -> per-batch coefficients pre-broadcast over HW lanes.
    ca = jnp.repeat(sched["sqrt_alphas_cumprod"][t].astype(jnp.float32), HW)[None, :]        # [1,N]
    cb = jnp.repeat(sched["sqrt_one_minus_alphas_cumprod"][t].astype(jnp.float32), HW)[None, :]

    # Fold temb[t]+b1 into the cond matmul: cond_aug gets B one-hot batch rows and
    # w1c_aug^T gets the matching (temb[t]+b1)^T columns.  bf16 matmul operands.
    onehot = jnp.repeat(jnp.eye(B, dtype=jnp.float32), HW, axis=1)                   # [B, N]
    cond_aug = jnp.concatenate([c2, onehot], axis=0).astype(jnp.bfloat16)             # [C+B, N]
    temb_b1 = (params["temb"][t] + params["b1"]).T                                    # [HD, B]
    w1x_t = params["w1x"].T.astype(jnp.bfloat16)                                      # [HD, C]
    w1c_aug_t = jnp.concatenate([params["w1c"].T, temb_b1], axis=1).astype(jnp.bfloat16)  # [HD, C+B]
    w2_t = params["w2"].T.astype(jnp.bfloat16)                                        # [C, HD]
    b2 = params["b2"].reshape(C, 1).astype(jnp.float32)                               # [C, 1]

    def kernel(x_ref, noise_ref, ca_ref, cb_ref, cond_ref,      # VMEM data
               w1x_ref, w1c_ref, w2_ref, b2_ref,                # VMEM weights
               out_ref):                                        # VMEM [1,1] f32
        # q_sample for the whole batch: one full-lane FMA over [C, B*HW].
        x_noisy = ca_ref[...] * x_ref[...] + cb_ref[...] * noise_ref[...]
        # denoise_fn: cat-conv1x1 done as a K-split (no concat scratch), temb+b1
        # arrives via the one-hot rows of cond_ref, then relu and second conv1x1.
        h = (jnp.dot(w1x_ref[...], x_noisy.astype(jnp.bfloat16),
                     preferred_element_type=jnp.float32)
             + jnp.dot(w1c_ref[...], cond_ref[...],
                       preferred_element_type=jnp.float32))
        h = jnp.maximum(h, 0.0)                                         # [HD, N]
        recon = (jnp.dot(w2_ref[...], h.astype(jnp.bfloat16),
                         preferred_element_type=jnp.float32)
                 + b2_ref[...])                                         # [C, N]
        # L1 loss: per-lane |noise - recon|, one cross-lane reduce, one (1,1) store.
        total = jnp.zeros((1, 1), jnp.float32) + jnp.sum(jnp.abs(noise_ref[...] - recon))
        out_ref[...] = total * inv_n

    loss = pl.pallas_call(
        kernel,
        out_shape=jax.ShapeDtypeStruct((1, 1), jnp.float32),
        grid=(1,),
        in_specs=[
            pl.BlockSpec((C, N), lambda i: (0, 0)),          # x           f32
            pl.BlockSpec((C, N), lambda i: (0, 0)),          # noise       f32
            pl.BlockSpec((1, N), lambda i: (0, 0)),          # sqrt_ac[t]  f32
            pl.BlockSpec((1, N), lambda i: (0, 0)),          # sqrt_1mac[t]f32
            pl.BlockSpec((C + B, N), lambda i: (0, 0)),      # [cond; onehot] bf16
            pl.BlockSpec((HD, C), lambda i: (0, 0)),         # w1x^T       bf16
            pl.BlockSpec((HD, C + B), lambda i: (0, 0)),     # [w1c^T, temb+b1] bf16
            pl.BlockSpec((C, HD), lambda i: (0, 0)),         # w2^T        bf16
            pl.BlockSpec((C, 1), lambda i: (0, 0)),          # b2          f32
        ],
        out_specs=pl.BlockSpec((1, 1), lambda i: (0, 0)),
        compiler_params=pltpu.CompilerParams(dimension_semantics=("arbitrary",)),
    )(x2, n2, ca, cb, cond_aug, w1x_t, w1c_aug_t, w2_t, b2)

    return loss[0, 0]


# pure-JAX reference of the same math (f32 throughout), for correctness checking
def reference_loss(x_nchw, cond_nchw, noise_nchw, t, params, sched):
    B, C, H, W = x_nchw.shape
    ca = sched["sqrt_alphas_cumprod"][t].reshape(B, 1, 1, 1)
    cb = sched["sqrt_one_minus_alphas_cumprod"][t].reshape(B, 1, 1, 1)
    x_noisy = ca * x_nchw + cb * noise_nchw
    xf = jnp.transpose(x_noisy, (0, 2, 3, 1)).reshape(B, H * W, C)
    cf = jnp.transpose(cond_nchw, (0, 2, 3, 1)).reshape(B, H * W, C)
    temb = params["temb"][t][:, None, :]
    h = jnp.maximum(xf @ params["w1x"] + cf @ params["w1c"] + params["b1"] + temb, 0.0)
    recon = h @ params["w2"] + params["b2"]
    nf = jnp.transpose(noise_nchw, (0, 2, 3, 1)).reshape(B, H * W, C)
    return jnp.mean(jnp.abs(nf - recon))


if __name__ == "__main__":
    B, C, H, W = 2, 4, 16, 16        # image_size=16, channels=4
    T = 100                          # timesteps
    HD = 32                          # hidden width of synthetic denoise_fn

    key = jax.random.PRNGKey(0)
    k_x, k_noise, k_t, k_w1x, k_w1c, k_w2, k_temb = jax.random.split(key, 7)

    x = jax.random.normal(k_x, (B, C, H, W), jnp.float32)
    # p_losses: condition_tensors defaults to zeros(b, c, h, w)
    cond = jnp.zeros((B, C, H, W), jnp.float32)
    # forward(): t = randint(0, num_timesteps, (b,)); noise = randn_like(x)
    t = jax.random.randint(k_t, (B,), 0, T)
    noise = jax.random.normal(k_noise, (B, C, H, W), jnp.float32)

    betas = cosine_beta_schedule(T)
    alphas_cumprod = np.cumprod(1.0 - betas, axis=0)
    sched = {
        "sqrt_alphas_cumprod": jnp.asarray(np.sqrt(alphas_cumprod), jnp.float32),
        "sqrt_one_minus_alphas_cumprod": jnp.asarray(np.sqrt(1.0 - alphas_cumprod),
                                                     jnp.float32),
    }

    params = {
        "w1x": 0.1 * jax.random.normal(k_w1x, (C, HD), jnp.float32),
        "w1c": 0.1 * jax.random.normal(k_w1c, (C, HD), jnp.float32),
        "b1": jnp.zeros((1, HD), jnp.float32),
        "w2": 0.1 * jax.random.normal(k_w2, (HD, C), jnp.float32),
        "b2": jnp.zeros((1, C), jnp.float32),
        "temb": 0.1 * jax.random.normal(k_temb, (T, HD), jnp.float32),
    }

    loss = gaussian_diffusion_loss(x, cond, noise, t, params, sched)
    loss = jax.block_until_ready(loss)

    ref = reference_loss(x, cond, noise, t, params, sched)
    assert np.isfinite(float(loss))
    np.testing.assert_allclose(np.asarray(loss), np.asarray(ref), rtol=1e-2, atol=1e-3)

    print("KERNEL_OK")
</pallas_src>

<mosaic_0001>
module attributes {stable_mosaic.version = 11 : i64} {
  func.func @kernel(%arg0: i32, %arg1: memref<4x512xf32, #tpu.memory_space<vmem>>, %arg2: memref<4x512xf32, #tpu.memory_space<vmem>>, %arg3: memref<1x512xf32, #tpu.memory_space<vmem>>, %arg4: memref<1x512xf32, #tpu.memory_space<vmem>>, %arg5: memref<6x512xbf16, #tpu.memory_space<vmem>>, %arg6: memref<32x4xbf16, #tpu.memory_space<vmem>>, %arg7: memref<32x6xbf16, #tpu.memory_space<vmem>>, %arg8: memref<4x32xbf16, #tpu.memory_space<vmem>>, %arg9: memref<4x1xf32, #tpu.memory_space<vmem>>, %arg10: memref<1x1xf32, #tpu.memory_space<vmem>>) attributes {dimension_semantics = [#tpu.dimension_semantics<arbitrary>], iteration_bounds = array<i64: 1>, scalar_prefetch = 0 : i64, scratch_operands = 0 : i64, tpu.core_type = #tpu.core_type<tc>, window_params = [{pipeline_mode = #tpu.pipeline_mode<synchronous>, transform_indices = @transform_0, window_bounds = array<i64: 4, 512>}, {pipeline_mode = #tpu.pipeline_mode<synchronous>, transform_indices = @transform_1, window_bounds = array<i64: 4, 512>}, {pipeline_mode = #tpu.pipeline_mode<synchronous>, transform_indices = @transform_2, window_bounds = array<i64: 1, 512>}, {pipeline_mode = #tpu.pipeline_mode<synchronous>, transform_indices = @transform_3, window_bounds = array<i64: 1, 512>}, {pipeline_mode = #tpu.pipeline_mode<synchronous>, transform_indices = @transform_4, window_bounds = array<i64: 6, 512>}, {pipeline_mode = #tpu.pipeline_mode<synchronous>, transform_indices = @transform_5, window_bounds = array<i64: 32, 4>}, {pipeline_mode = #tpu.pipeline_mode<synchronous>, transform_indices = @transform_6, window_bounds = array<i64: 32, 6>}, {pipeline_mode = #tpu.pipeline_mode<synchronous>, transform_indices = @transform_7, window_bounds = array<i64: 4, 32>}, {pipeline_mode = #tpu.pipeline_mode<synchronous>, transform_indices = @transform_8, window_bounds = array<i64: 4, 1>}, {pipeline_mode = #tpu.pipeline_mode<synchronous>, transform_indices = @transform_9, window_bounds = array<i64: 1, 1>}]} {
    %c0 = arith.constant 0 : index
    %c0_0 = arith.constant 0 : index
    %0 = vector.load %arg3[%c0, %c0_0] : memref<1x512xf32, #tpu.memory_space<vmem>>, vector<1x512xf32>
    %c0_1 = arith.constant 0 : index
    %c0_2 = arith.constant 0 : index
    %1 = vector.load %arg1[%c0_1, %c0_2] : memref<4x512xf32, #tpu.memory_space<vmem>>, vector<4x512xf32>
    %2 = vector.broadcast %0 : vector<1x512xf32> to vector<4x512xf32>
    %3 = arith.mulf %2, %1 : vector<4x512xf32>
    %c0_3 = arith.constant 0 : index
    %c0_4 = arith.constant 0 : index
    %4 = vector.load %arg4[%c0_3, %c0_4] : memref<1x512xf32, #tpu.memory_space<vmem>>, vector<1x512xf32>
    %c0_5 = arith.constant 0 : index
    %c0_6 = arith.constant 0 : index
    %5 = vector.load %arg2[%c0_5, %c0_6] : memref<4x512xf32, #tpu.memory_space<vmem>>, vector<4x512xf32>
    %6 = vector.broadcast %4 : vector<1x512xf32> to vector<4x512xf32>
    %7 = arith.mulf %6, %5 : vector<4x512xf32>
    %8 = arith.addf %3, %7 : vector<4x512xf32>
    %c0_7 = arith.constant 0 : index
    %c0_8 = arith.constant 0 : index
    %9 = vector.load %arg6[%c0_7, %c0_8] : memref<32x4xbf16, #tpu.memory_space<vmem>>, vector<32x4xbf16>
    %10 = arith.truncf %8 : vector<4x512xf32> to vector<4x512xbf16>
    %cst = arith.constant dense<0.000000e+00> : vector<32x512xf32>
    %11 = tpu.matmul %9, %10, %cst {dimension_numbers = #tpu.dot_dimension_numbers<[1], [0], [0], [1], [0, 0, 1, 1], [], []>} : vector<32x4xbf16>, vector<4x512xbf16>, vector<32x512xf32> -> vector<32x512xf32>
    %c0_9 = arith.constant 0 : index
    %c0_10 = arith.constant 0 : index
    %12 = vector.load %arg7[%c0_9, %c0_10] : memref<32x6xbf16, #tpu.memory_space<vmem>>, vector<32x6xbf16>
    %c0_11 = arith.constant 0 : index
    %c0_12 = arith.constant 0 : index
    %13 = vector.load %arg5[%c0_11, %c0_12] : memref<6x512xbf16, #tpu.memory_space<vmem>>, vector<6x512xbf16>
    %cst_13 = arith.constant dense<0.000000e+00> : vector<32x512xf32>
    %14 = tpu.matmul %12, %13, %cst_13 {dimension_numbers = #tpu.dot_dimension_numbers<[1], [0], [0], [1], [0, 0, 1, 1], [], []>} : vector<32x6xbf16>, vector<6x512xbf16>, vector<32x512xf32> -> vector<32x512xf32>
    %15 = arith.addf %11, %14 : vector<32x512xf32>
    %cst_14 = arith.constant 0.000000e+00 : f32
    %16 = vector.broadcast %cst_14 : f32 to vector<32x512xf32>
    %17 = arith.maximumf %15, %16 : vector<32x512xf32>
    %c0_15 = arith.constant 0 : index
    %c0_16 = arith.constant 0 : index
    %18 = vector.load %arg8[%c0_15, %c0_16] : memref<4x32xbf16, #tpu.memory_space<vmem>>, vector<4x32xbf16>
    %19 = arith.truncf %17 : vector<32x512xf32> to vector<32x512xbf16>
    %cst_17 = arith.constant dense<0.000000e+00> : vector<4x512xf32>
    %20 = tpu.matmul %18, %19, %cst_17 {dimension_numbers = #tpu.dot_dimension_numbers<[1], [0], [0], [1], [0, 0, 1, 1], [], []>} : vector<4x32xbf16>, vector<32x512xbf16>, vector<4x512xf32> -> vector<4x512xf32>
    %c0_18 = arith.constant 0 : index
    %c0_19 = arith.constant 0 : index
    %21 = vector.load %arg9[%c0_18, %c0_19] : memref<4x1xf32, #tpu.memory_space<vmem>>, vector<4x1xf32>
    %22 = vector.broadcast %21 : vector<4x1xf32> to vector<4x512xf32>
    %23 = arith.addf %20, %22 : vector<4x512xf32>
    %cst_20 = arith.constant 0.000000e+00 : f32
    %24 = vector.broadcast %cst_20 : f32 to vector<1x1xf32>
    %c0_21 = arith.constant 0 : index
    %c0_22 = arith.constant 0 : index
    %25 = vector.load %arg2[%c0_21, %c0_22] : memref<4x512xf32, #tpu.memory_space<vmem>>, vector<4x512xf32>
    %26 = arith.subf %25, %23 : vector<4x512xf32>
    %27 = math.absf %26 : vector<4x512xf32>
    %28 = vector.shape_cast %27 : vector<4x512xf32> to vector<1x4x512xf32>
    %cst_23 = arith.constant dense<0.000000e+00> : vector<1xf32>
    %29 = vector.multi_reduction <add>, %28, %cst_23 [1, 2] : vector<1x4x512xf32> to vector<1xf32>
    %30 = vector.shape_cast %29 : vector<1xf32> to vector<1x1x1xf32>
    %31 = vector.extract %30[0, 0, 0] : f32 from vector<1x1x1xf32>
    %32 = vector.broadcast %31 : f32 to vector<1x1xf32>
    %33 = arith.addf %24, %32 : vector<1x1xf32>
    %cst_24 = arith.constant 4.8828125E-4 : f32
    %34 = vector.broadcast %cst_24 : f32 to vector<1x1xf32>
    %35 = arith.mulf %33, %34 : vector<1x1xf32>
    %c0_25 = arith.constant 0 : index
    %c0_26 = arith.constant 0 : index
    %36 = vector.load %arg10[%c0_25, %c0_26] : memref<1x1xf32, #tpu.memory_space<vmem>>, vector<1x1xf32>
    tpu.vector_store %arg10[%c0_25, %c0_26], %35 {strides = array<i32>} : memref<1x1xf32, #tpu.memory_space<vmem>>, vector<1x1xf32>,
    return
  }
  func.func @transform_0(%arg0: i32) -> (i32, i32) {
    %c0_i32 = arith.constant 0 : i32
    %c0_i32_0 = arith.constant 0 : i32
    %c0_i32_1 = arith.constant 0 : i32
    return %c0_i32, %c0_i32_0 : i32, i32
  }
  func.func @transform_1(%arg0: i32) -> (i32, i32) {
    %c0_i32 = arith.constant 0 : i32
    %c0_i32_0 = arith.constant 0 : i32
    %c0_i32_1 = arith.constant 0 : i32
    return %c0_i32, %c0_i32_0 : i32, i32
  }
  func.func @transform_2(%arg0: i32) -> (i32, i32) {
    %c0_i32 = arith.constant 0 : i32
    %c0_i32_0 = arith.constant 0 : i32
    %c0_i32_1 = arith.constant 0 : i32
    return %c0_i32, %c0_i32_0 : i32, i32
  }
  func.func @transform_3(%arg0: i32) -> (i32, i32) {
    %c0_i32 = arith.constant 0 : i32
    %c0_i32_0 = arith.constant 0 : i32
    %c0_i32_1 = arith.constant 0 : i32
    return %c0_i32, %c0_i32_0 : i32, i32
  }
  func.func @transform_4(%arg0: i32) -> (i32, i32) {
    %c0_i32 = arith.constant 0 : i32
    %c0_i32_0 = arith.constant 0 : i32
    %c0_i32_1 = arith.constant 0 : i32
    return %c0_i32, %c0_i32_0 : i32, i32
  }
  func.func @transform_5(%arg0: i32) -> (i32, i32) {
    %c0_i32 = arith.constant 0 : i32
    %c0_i32_0 = arith.constant 0 : i32
    %c0_i32_1 = arith.constant 0 : i32
    return %c0_i32, %c0_i32_0 : i32, i32
  }
  func.func @transform_6(%arg0: i32) -> (i32, i32) {
    %c0_i32 = arith.constant 0 : i32
    %c0_i32_0 = arith.constant 0 : i32
    %c0_i32_1 = arith.constant 0 : i32
    return %c0_i32, %c0_i32_0 : i32, i32
  }
  func.func @transform_7(%arg0: i32) -> (i32, i32) {
    %c0_i32 = arith.constant 0 : i32
    %c0_i32_0 = arith.constant 0 : i32
    %c0_i32_1 = arith.constant 0 : i32
    return %c0_i32, %c0_i32_0 : i32, i32
  }
  func.func @transform_8(%arg0: i32) -> (i32, i32) {
    %c0_i32 = arith.constant 0 : i32
    %c0_i32_0 = arith.constant 0 : i32
    %c0_i32_1 = arith.constant 0 : i32
    return %c0_i32, %c0_i32_0 : i32, i32
  }
  func.func @transform_9(%arg0: i32) -> (i32, i32) {
    %c0_i32 = arith.constant 0 : i32
    %c0_i32_0 = arith.constant 0 : i32
    %c0_i32_1 = arith.constant 0 : i32
    return %c0_i32, %c0_i32_0 : i32, i32
  }
}

</mosaic_0001>

<bundles_post_ra>
// kernel: tpu_custom_call.1
= control target key start
LH: loop header
LB: loop body
LE: loop exit
PB: predicated region body
PF: predicated region fallthrough
CT: control target
= control target key end

     0   :  { %14 = vsyncpa [#allocation3], 0  ;;  %s885_s0 = inlined_call_operand.vmem [shape: f32[4,512], index: 0, kind: input, shape index: {}]   ;;  %s886_s1 = inlined_call_operand.vmem [shape: f32[4,512], index: 1, kind: input, shape index: {}]   ;;  %s887_s2 = inlined_call_operand.hbm [shape: f32[1,512], index: 2, kind: input, shape index: {}]   ;;  %s888_s3 = inlined_call_operand.hbm [shape: f32[1,512], index: 3, kind: input, shape index: {}]   ;;  %s889_s4 = inlined_call_operand.vmem [shape: bf16[6,512], index: 4, kind: input, shape index: {}]   ;;  %s890_s5 = inlined_call_operand.vmem [shape: bf16[32,4], index: 5, kind: input, shape index: {}]   ;;  %s891_s6 = inlined_call_operand.vmem [shape: bf16[32,6], index: 6, kind: input, shape index: {}]   ;;  %s892_s7 = inlined_call_operand.vmem [shape: bf16[4,32], index: 7, kind: input, shape index: {}]   ;;  %s893_s8 = inlined_call_operand.vmem [shape: f32[4,1], index: 8, kind: input, shape index: {}]   ;;  %s894_s9 = inlined_call_operand.hbm [shape: f32[1,1], index: 9, kind: output, shape index: {}]  }
   0x1   :  { %15 = vsyncpa [#allocation6], 0 }
   0x2   :  { %16 = vsyncpa [#allocation4], 0  ;;  %s728_s30 = smov [#allocation2]   ;;  %s729_s11 = smov [#allocation5]  }
   0x3   :  { %s27_s10 = sshll.u32 %s728_s30, 4  ;;  %s37_s12 = sshll.u32 %s729_s11, 4  ;;  %s28_s10 = int_to_ptr.vmem [resolvable:$true] %s27_s10  ;;  %s38_s12 = int_to_ptr.vmem [resolvable:$true] %s37_s12 }
   0x4   :  { %s656_s15 = scalar_lea.hbm %s887_s2, 64 }
   0x5   :  { %p657_p0 = scmp.ne.s32.totalorder %s887_s2, %s656_s15  ;;  %p660_p1 = scmp.lt.u32.totalorder %s656_s15, %s887_s2 }
   0x7   :  { %p662_p2 = pnand %p660_p1, %p657_p0 }
   0x9   :  { %665 = shalt.err (!%p662_p2)
}
   0xa   :  { %s666_s20 = scalar_lea.vmem %s28_s10, 64  ;;  %p671_p4 = scmp.lt.s32.totalorder %s28_s10, %s28_s10 }
   0xb   :  { %p667_p3 = scmp.ne.s32.totalorder %s28_s10, %s666_s20  ;;  %p672_p5 = scmp.lt.s32.totalorder %s666_s20, %s666_s20 }
   0xd   :  { %p673_p6 = por %p672_p5, %p671_p4 }
   0xf   :  { %p674_p7 = pnand %p673_p6, %p667_p3 }
  0x11   :  { %677 = shalt.err (!%p674_p7)
}
  0x12   :  { %30 = dma.hbm_to_vmem [thread:$0]  %s887_s2, 64, %s28_s10, [#allocation3]  }
  0x13   :  { %s678_s25 = scalar_lea.hbm %s888_s3, 64 }
  0x14   :  { %p679_p8 = scmp.ne.s32.totalorder %s888_s3, %s678_s25  ;;  %p682_p9 = scmp.lt.u32.totalorder %s678_s25, %s888_s3 }
  0x16   :  { %p684_p10 = pnand %p682_p9, %p679_p8 }
  0x18   :  { %687 = shalt.err (!%p684_p10)
}
  0x19   :  { %s688_s30 = scalar_lea.vmem %s38_s12, 64  ;;  %p693_p12 = scmp.lt.s32.totalorder %s38_s12, %s38_s12 }
  0x1a   :  { %p689_p11 = scmp.ne.s32.totalorder %s38_s12, %s688_s30  ;;  %p694_p13 = scmp.lt.s32.totalorder %s688_s30, %s688_s30 }
  0x1c   :  { %p695_p0 = por %p694_p13, %p693_p12 }
  0x1e   :  { %p696_p1 = pnand %p695_p0, %p689_p11 }
  0x20   :  { %699 = shalt.err (!%p696_p1)
}
  0x21   :  { %40 = dma.hbm_to_vmem [thread:$0]  %s888_s3, 64, %s38_s12, [#allocation6]  }
  0x22   :  { %722 = dma.done.wait [#allocation3], 64  }
  0x23   :  { %723 = vsyncadd [#allocation3], 4294967232 }
  0x24   :  { %724 = dma.done.wait [#allocation6], 64  }
  0x25   :  { %725 = vsyncadd [#allocation6], 4294967232  ;;  %v62_v0 = vlaneseq  ;;  %v730_v1 = vmov 0   ;;  %vm171_vm0 = vcmask 1042432   ;;  %v142_v7 = vld [vmem:[%s889_s4] sm:$0x77] }
  0x26   :  { %216 = vmatprep.mubr.bf16.mxu0 %v730_v1  ;;  %269 = vmatprep.mubr.bf16.mxu1 %v730_v1  ;;  %v143_v8 = vld [vmem:[%s889_s4 + $0x8] sm:$0x77]  ;;  %v602_v9 = vcombine.high %v142_v7, %v142_v7  ;;  %v601_v11 = vcombine.low %v142_v7, %v142_v7  ;;  %v648_v13 = vld [vmem:[%s891_s6] sm:$0xff]   ;;  %vm164_vm1 = vcmask 48128   ;;  %vm307_vm2 = vcmask 1041408  }
  0x27   :  { %v63_v2 = vshrl.u32 %v62_v0, 7  ;;  %643 = vset.pattern.permute.xlu0 %v730_v1  ;;  %v604_v10 = vcombine.high %v143_v8, %v143_v8  ;;  %v603_v12 = vcombine.low %v143_v8, %v143_v8  ;;  %v58_v14 = vld [vmem:[#allocation2] sm:$0xf]  ;;  %v92_v17 = vld [vmem:[#allocation5] sm:$0xf]  ;;  %v60_v29 = vld [vmem:[%s885_s0 + $0x8] sm:$0xff] }
  0x28   :  { %v59_v15 = vld [vmem:[%s885_s0] sm:$0xff]  ;;  %605 = vmatprep.subr.msk.bf16.mxu0 %vm171_vm0, %v602_v9  ;;  %v173_v22 = vsel %vm171_vm0, %v601_v11, 0  ;;  %v838_v30 = vld [vmem:[%s886_s1 + $0x8] sm:$0xff]  ;;  %v85_v32 = vcombine.high %v60_v29, %v60_v29  ;;  %vm300_vm3 = vcmask 31744   ;;  %vm457_vm4 = vcmask 261120  }
  0x29   :  { %v68_v3 = vsub.s32 1, %v63_v2  ;;  %v64_v4 = vsub.s32 0, %v63_v2  ;;  %v76_v5 = vsub.s32 3, %v63_v2  ;;  %v72_v6 = vsub.s32 2, %v63_v2  ;;  %v824_v18 = vld [vmem:[%s886_s1] sm:$0xff]  ;;  %608 = vmatprep.subr.msk.bf16.mxu1 %vm171_vm0, %v604_v10  ;;  %185 = vmatpush1.bf16.msra.mxu0 %v173_v22  ;;  %v651_v48 = vld [vmem:[%s891_s6 + $0x8] sm:$0xff]  }
  0x2a   :  { %v179_v23 = vsel %vm171_vm0, %v603_v12, 0  ;;  %v84_v24 = vcombine.high %v59_v15, %v59_v15  ;;  %v118_v26 = vcombine.high %v824_v18, %v824_v18  ;;  %v119_v34 = vcombine.high %v838_v30, %v838_v30  ;;  %v654_v53 = vld [vmem:[%s890_s5] sm:$0xff]   ;;  %v655_v54 = vld [vmem:[%s890_s5 + $0x8] sm:$0xff]  }
  0x2b   :  { %v69_v16 = vrot.slane %v58_v14, %v68_v3  ;;  %v65_v19 = vrot.slane %v58_v14, %v64_v4  ;;  %v77_v20 = vrot.slane %v58_v14, %v76_v5  ;;  %v73_v21 = vrot.slane %v58_v14, %v72_v6  ;;  %238 = vmatpush1.bf16.msra.mxu1 %v179_v23  ;;  %v451_v55 = vld [vmem:[%s893_s8] sm:$0xf] }
  0x2c   :  { %v103_v25 = vrot.slane %v92_v17, %v68_v3  ;;  %v99_v28 = vrot.slane %v92_v17, %v64_v4  ;;  %v111_v33 = vrot.slane %v92_v17, %v76_v5  ;;  %v107_v38 = vrot.slane %v92_v17, %v72_v6  ;;  %606 = vmatmul.mubr.msk.bf16.vlgmr.msra.gmra.mrb[0].mxu0 %vm164_vm1, %v648_v13 }
  0x2d   :  { %v88_v27 = vmul.f32 %v65_v19, %v59_v15  ;;  %v89_v31 = vmul.f32 %v84_v24, %v69_v16  ;;  %v90_v37 = vmul.f32 %v73_v21, %v60_v29  ;;  %v91_v39 = vmul.f32 %v85_v32, %v77_v20  ;;  %226 = vmatprep.mubr.bf16.mxu0 %v730_v1 }
  0x2e   :  { %v123_v35 = vmul.f32 %v118_v26, %v103_v25  ;;  %v122_v36 = vmul.f32 %v99_v28, %v824_v18  ;;  %609 = vmatmul.mubr.msk.bf16.vlgmr.msra.gmra.mrb[0].mxu1 %vm164_vm1, %v648_v13  ;;  %v125_v40 = vmul.f32 %v119_v34, %v111_v33  ;;  %v124_v43 = vmul.f32 %v107_v38, %v838_v30  ;;  %v442_v34 = vld [vmem:[%s892_s7] sm:$0x3]  ;;  %s731_s7 = smov [#allocation7]  }
  0x2f   :  { %279 = vmatprep.mubr.bf16.mxu1 %v730_v1  ;;  %454 = vperm.xlu0 %643, %v451_v55   ;;  %vm561_vm5 = vcmask 1043456   ;;  %s589_s28 = sshll.u32 %s731_s7, 4  ;;  %vm581_vm6 = vcmask 0   ;;  %s590_s28 = int_to_ptr.vmem [resolvable:$true] %s589_s28 }
  0x30   :  { %v127_v41 = vadd.f32 %v123_v35, %v89_v31  ;;  %v126_v42 = vadd.f32 %v122_v36, %v88_v27  ;;  %v129_v44 = vadd.f32 %v125_v40, %v91_v39  ;;  %v128_v47 = vadd.f32 %v124_v43, %v90_v37  ;;  %s700_s30 = scalar_lea.vmem %s590_s28, 16  ;;  %s704_s2 = scalar_lea.vmem %s590_s28, 32 }
  0x31   :  { %p701_p2 = scmp.ne.s32.totalorder %s590_s28, %s700_s30  ;;  %p705_p3 = scmp.lt.s32.totalorder %s590_s28, %s590_s28 }
  0x32   :  { %v135_v45 = vpack.c.bf16 %v127_v41, %v127_v41  ;;  %v134_v46 = vpack.c.bf16 %v126_v42, %v126_v42  ;;  %v137_v49 = vpack.c.bf16 %v129_v44, %v129_v44  ;;  %v136_v51 = vpack.c.bf16 %v128_v47, %v128_v47  ;;  %p706_p4 = scmp.lt.s32.totalorder %s704_s2, %s700_s30 }
  0x34   :  { %613 = vmatprep.subr.msk.bf16.mxu0 %vm307_vm2, %v135_v45  ;;  %v309_v50 = vsel %vm307_vm2, %v134_v46, 0  ;;  %616 = vmatprep.subr.msk.bf16.mxu1 %vm307_vm2, %v137_v49  ;;  %v315_v52 = vsel %vm307_vm2, %v136_v51, 0  ;;  %p707_p5 = por %p706_p4, %p705_p3 }
  0x35   :  { %321 = vmatpush1.bf16.msra.mxu0 %v309_v50  ;;  %374 = vmatpush1.bf16.msra.mxu1 %v315_v52 }
  0x36   :  { %607 = vmatmul.mubr.msk.bf16.gmra.mrb[4].mxu0 %vm164_vm1, %v651_v48  ;;  %610 = vmatmul.mubr.msk.bf16.gmra.mrb[4].mxu1 %vm164_vm1, %v651_v48  ;;  %p708_p6 = pnand %p707_p5, %p701_p2 }
  0x37   :  { %352 = vmatprep.mubr.bf16.mxu0 %v730_v1  ;;  %405 = vmatprep.mubr.bf16.mxu1 %v730_v1 }
  0x3e   :  { %614 = vmatmul.mubr.msk.bf16.vlgmr.msra.gmra.mrb[0].mxu0 %vm300_vm3, %v654_v53  ;;  %617 = vmatmul.mubr.msk.bf16.vlgmr.msra.gmra.mrb[0].mxu1 %vm300_vm3, %v654_v53 }
  0x3f   :  { %362 = vmatprep.mubr.bf16.mxu0 %v730_v1  ;;  %415 = vmatprep.mubr.bf16.mxu1 %v730_v1 }
  0x46   :  { %615 = vmatmul.mubr.msk.bf16.gmra.mrb[4].mxu0 %vm300_vm3, %v655_v54  ;;  %618 = vmatmul.mubr.msk.bf16.gmra.mrb[4].mxu1 %vm300_vm3, %v655_v54 }
  0x47   :  { %493 = vmatprep.mubr.bf16.mxu0 %v730_v1  ;;  %534 = vmatprep.mubr.bf16.mxu1 %v730_v1 }
  0xae   :  { %v455_v35 = vpop.permute.xlu0 %454 }
 0x111   :  { %v354_v56 = vpop.f32.mrb[0].mxu0  ;;  %v407_v57 = vpop.f32.mrb[0].mxu1 }
 0x112   :  { %v356_v58 = vpop.f32.mrb[1].mxu0  ;;  %v409_v59 = vpop.f32.mrb[1].mxu1  ;;  %v426_v62 = vmax.f32 %v354_v56, 0.0  ;;  %v428_v63 = vmax.f32 %v407_v57, 0.0 }
 0x113   :  { %v358_v60 = vpop.f32.mrb[2].mxu0  ;;  %v411_v61 = vpop.f32.mrb[2].mxu1  ;;  %v427_v5 = vmax.f32 %v356_v58, 0.0  ;;  %v429_v6 = vmax.f32 %v409_v59, 0.0 }
 0x114   :  { %v430_v0 = vmax.f32 %v358_v60, 0.0  ;;  %v432_v2 = vmax.f32 %v411_v61, 0.0  ;;  %v360_v3 = vpop.f32.mrb[3].mxu0  ;;  %v413_v4 = vpop.f32.mrb[3].mxu1 }
 0x115   :  { %v431_v1 = vmax.f32 %v360_v3, 0.0  ;;  %v433_v7 = vmax.f32 %v413_v4, 0.0 }
 0x116   :  { %v443_v8 = vpack.c.bf16 %v430_v0, %v426_v62  ;;  %v445_v9 = vpack.c.bf16 %v432_v2, %v428_v63 }
 0x117   :  { %v444_v10 = vpack.c.bf16 %v431_v1, %v427_v5  ;;  %v446_v11 = vpack.c.bf16 %v433_v7, %v429_v6 }
 0x119   :  { %v364_v12 = vpop.f32.mrb[4].mxu0  ;;  %v417_v13 = vpop.f32.mrb[4].mxu1  ;;  %461 = vmatprep.subr.bf16.mxu0 %v444_v10  ;;  %502 = vmatprep.subr.bf16.mxu1 %v446_v11 }
 0x11a   :  { %v366_v14 = vpop.f32.mrb[5].mxu0  ;;  %v419_v15 = vpop.f32.mrb[5].mxu1  ;;  %462 = vmatpush1.bf16.msra.mxu0 %v443_v8  ;;  %503 = vmatpush1.bf16.msra.mxu1 %v445_v9  ;;  %v434_v19 = vmax.f32 %v364_v12, 0.0  ;;  %v436_v20 = vmax.f32 %v417_v13, 0.0 }
 0x11b   :  { %v368_v16 = vpop.f32.mrb[6].mxu0  ;;  %v421_v17 = vpop.f32.mrb[6].mxu1  ;;  %v435_v25 = vmax.f32 %v366_v14, 0.0  ;;  %v437_v26 = vmax.f32 %v419_v15, 0.0 }
 0x11c   :  { %v438_v21 = vmax.f32 %v368_v16, 0.0  ;;  %v440_v22 = vmax.f32 %v421_v17, 0.0  ;;  %v370_v23 = vpop.f32.mrb[7].mxu0  ;;  %v423_v24 = vpop.f32.mrb[7].mxu1 }
 0x11d   :  { %v439_v27 = vmax.f32 %v370_v23, 0.0  ;;  %v441_v28 = vmax.f32 %v423_v24, 0.0 }
 0x11e   :  { %v447_v29 = vpack.c.bf16 %v438_v21, %v434_v19  ;;  %v449_v31 = vpack.c.bf16 %v440_v22, %v436_v20 }
 0x11f   :  { %v448_v32 = vpack.c.bf16 %v439_v27, %v435_v25  ;;  %v450_v33 = vpack.c.bf16 %v441_v28, %v437_v26 }
 0x121   :  { %463 = vmatprep.subr.bf16.mxu0 %v448_v32  ;;  %504 = vmatprep.subr.bf16.mxu1 %v450_v33 }
 0x122   :  { %464 = vmatpush1.bf16.msra.mxu0 %v447_v29  ;;  %505 = vmatpush1.bf16.msra.mxu1 %v449_v31 }
 0x125   :  { %619 = vmatmul.mubr.msk.bf16.vlgmr.msra.gmra.mrb[8].mxu0 %vm457_vm4, %v442_v34  ;;  %620 = vmatmul.mubr.msk.bf16.vlgmr.msra.gmra.mrb[8].mxu1 %vm457_vm4, %v442_v34 }
 0x1f8   :  { %v495_v36 = vpop.f32.mrb[8].mxu0  ;;  %v536_v37 = vpop.f32.mrb[8].mxu1 }
 0x1f9   :  { %v496_v38 = vadd.f32 %v495_v36, %v455_v35  ;;  %v497_v39 = vpop.f32.mrb[9].mxu0  ;;  %v537_v40 = vadd.f32 %v536_v37, %v455_v35  ;;  %v538_v41 = vpop.f32.mrb[9].mxu1 }
 0x1fa   :  { %v498_v42 = vadd.f32 %v497_v39, %v455_v35  ;;  %v499_v43 = vpop.f32.mrb[10].mxu0  ;;  %v539_v44 = vadd.f32 %v538_v41, %v455_v35  ;;  %v540_v45 = vpop.f32.mrb[10].mxu1 }
 0x1fb   :  { %v500_v46 = vpop.f32.mrb[11].mxu0  ;;  %v541_v47 = vpop.f32.mrb[11].mxu1 }
 0x1fc   :  { %v547_v48 = vcombine.low %v496_v38, %v498_v42  ;;  %v548_v49 = vcombine.low %v537_v40, %v539_v44 }
 0x1fe   :  { %v551_v50 = vsub.f32 %v824_v18, %v547_v48  ;;  %v552_v51 = vsub.f32 %v838_v30, %v548_v49 }
 0x200   :  { %v553_v52 = vand.u32 2147483647, %v551_v50  ;;  %v554_v53 = vand.u32 2147483647, %v552_v51 }
 0x202   :  { %v557_v54 = vcombine.high %v553_v52, %v553_v52  ;;  %v558_v55 = vcombine.high %v554_v53, %v554_v53  ;;  %v562_v56 = vsel %vm561_vm5, %v553_v52, 0.0  ;;  %v565_v59 = vsel %vm561_vm5, %v554_v53, 0.0 }
 0x204   :  { %v563_v57 = vsel %vm561_vm5, %v557_v54, 0.0  ;;  %v567_v61 = vsel %vm561_vm5, %v558_v55, 0.0 }
 0x205   :  { %v564_v58 = vadd.f32 %v563_v57, %v562_v56 }
 0x207   :  { %v566_v60 = vadd.f32 %v565_v59, %v564_v58 }
 0x209   :  { %v568_v62 = vadd.f32 %v567_v61, %v566_v60 }
 0x20b   :  { %569 = vadd.xlane.f32.xlu0 %v568_v62 }
 0x298   :  { %v570_v63 = vpop.xlane.xlu0 %569 }
 0x299   :  { %v571_v0 = vrot.slane %v570_v63, 4 }
 0x29b   :  { %v572_v2 = vadd.f32 %v571_v0, %v570_v63 }
 0x29d   :  { %v573_v3 = vrot.slane %v572_v2, 2 }
 0x29f   :  { %v574_v18 = vadd.f32 %v573_v3, %v572_v2 }
 0x2a1   :  { %v575_v4 = vrot.slane %v574_v18, 1 }
 0x2a3   :  { %v576_v30 = vadd.f32 %v575_v4, %v574_v18 }
 0x2a5   :  { %637 = vpush %v576_v30 }
 0x2d6   :  { %s638_s29 = spop %637 }
 0x2d7   :  { %v578_v5 = vstv %s638_s29 }
 0x2d8   :  { %v580_v6 = vmul.f32 0.00048828125, %v578_v5 }
 0x2da   :  { %582 = vst.msk [vmem:[#allocation7] sm:$0x1] %vm581_vm6, %v580_v6 }
 0x2db   :  { %711 = shalt.err (!%p708_p6)
}
 0x2dc   :  { %s712_s3 = scalar_lea.hbm %s894_s9, 16 }
 0x2dd   :  { %p713_p7 = scmp.ne.s32.totalorder %s894_s9, %s712_s3  ;;  %p716_p8 = scmp.lt.u32.totalorder %s712_s3, %s894_s9 }
 0x2df   :  { %p718_p9 = pnand %p716_p8, %p713_p7 }
 0x2e1   :  { %721 = shalt.err (!%p718_p9)
}
 0x2e2   :  { %592 = dma.vmem_to_hbm [thread:$0]  %s590_s28, 16, %s894_s9, [#allocation4]  }
 0x2e3   :  { %726 = dma.done.wait [#allocation4], 16  }
 0x2e4   :  { %727 = vsyncadd [#allocation4], 4294967280 }
 0x2e5   :  { %596 = vsyncpa [#allocation3], 1 }
 0x2e6   :  { %597 = vsyncpa [#allocation6], 1 }
 0x2e7   :  { %598 = vsyncpa [#allocation4], 1 }

</bundles_post_ra>
